<compile_context>
chip_gen: v5e
topology: v5e:2x2
jax: 0.10.0
libtpu: 0.0.40
codegen_flags: <defaults>
</compile_context>

<pallas_src>
import functools
import math

import jax
import jax.numpy as jnp
from jax.experimental import pallas as pl
from jax.experimental.pallas import tpu as pltpu

SIZE = 12
HIDDEN = 100
IN_DIM = SIZE * 10          # 120
OUT_DIM = SIZE * 2 * 10     # 240

HID_PAD = 128               # hidden 100 -> 128 (lane aligned)


def _round_up(n, m):
    return ((n + m - 1) // m) * m


def _pad2(a, rows, cols):
    return jnp.pad(a, ((0, rows - a.shape[0]), (0, cols - a.shape[1])))


def _mlp_kernel(x_ref,
                w1_ref, b1_ref,
                w2_ref, b2_ref,
                w3_ref, b3_ref,
                w4_ref, b4_ref,
                o_ref):
    f32, bf16 = jnp.float32, jnp.bfloat16

    x = x_ref[...].astype(bf16)                                   # (TB, 120)

    # Linear(120 -> 100) + ReLU      (output cols padded to 128)
    h = jnp.dot(x, w1_ref[...], preferred_element_type=f32) + b1_ref[...]
    h = jnp.maximum(h, 0.0)

    # Linear(100 -> 100) + Tanh      (128 x 128, padded lanes stay 0)
    h = jnp.dot(h.astype(bf16), w2_ref[...], preferred_element_type=f32) + b2_ref[...]
    h = jnp.tanh(h)

    # Linear(100 -> 100) + ReLU
    h = jnp.dot(h.astype(bf16), w3_ref[...], preferred_element_type=f32) + b3_ref[...]
    h = jnp.maximum(h, 0.0)

    # Linear(100 -> 240) + Sigmoid
    h = jnp.dot(h.astype(bf16), w4_ref[...], preferred_element_type=f32) + b4_ref[...]
    # sigmoid(x) == 0.5 * (tanh(x/2) + 1): single EUP pass, mul/add on VPU.
    o_ref[...] = (0.5 * (jnp.tanh(0.5 * h) + 1.0)).astype(o_ref.dtype)


def prepare_params(params):
    """One-time: pad to lane-aligned shapes and cast weights to bf16."""
    (w1, b1), (w2, b2), (w3, b3), (w4, b4) = params
    bf16 = jnp.bfloat16
    return (
        _pad2(w1, IN_DIM, HID_PAD).astype(bf16),    # (120, 128)
        _pad2(b1, 1, HID_PAD),                      # (1, 128)  f32 (zeros in pad)
        _pad2(w2, HID_PAD, HID_PAD).astype(bf16),   # (128, 128)
        _pad2(b2, 1, HID_PAD),
        _pad2(w3, HID_PAD, HID_PAD).astype(bf16),   # (128, 128)
        _pad2(b3, 1, HID_PAD),
        _pad2(w4, HID_PAD, OUT_DIM).astype(bf16),   # (128, 240)
        b4,                                         # (1, 240)  f32
    )


def _choose_tb(B, tb):
    """Batch tile: whole batch if tiny, else >=2 grid steps, multiple of 8."""
    if B <= 16:
        return B                                    # single full-array block
    two_way = _round_up(pl.cdiv(B, 2), 8)           # keep v7x's 2nd TC busy
    return min(tb, two_way)


@functools.partial(jax.jit, static_argnames=("tb",))
def net_forward(x, packed_params, *, tb=512):
    """x: (B, 120) f32 -> (B, 240) f32."""
    B = x.shape[0]
    TB = _choose_tb(B, tb)
    grid = (pl.cdiv(B, TB),)                        # ragged last block is masked

    def resident(shape):
        return pl.BlockSpec(shape, lambda i: (0, 0))

    in_specs = [
        pl.BlockSpec((TB, IN_DIM), lambda i: (i, 0)),       # x marches over batch
        resident((IN_DIM, HID_PAD)), resident((1, HID_PAD)),
        resident((HID_PAD, HID_PAD)), resident((1, HID_PAD)),
        resident((HID_PAD, HID_PAD)), resident((1, HID_PAD)),
        resident((HID_PAD, OUT_DIM)), resident((1, OUT_DIM)),
    ]
    out_spec = pl.BlockSpec((TB, OUT_DIM), lambda i: (i, 0))

    w_bytes = (2 * (IN_DIM * HID_PAD + 2 * HID_PAD * HID_PAD + HID_PAD * OUT_DIM)
               + 4 * (3 * HID_PAD + OUT_DIM))
    cost = pl.CostEstimate(
        flops=2 * B * (IN_DIM * HIDDEN + 2 * HIDDEN * HIDDEN + HIDDEN * OUT_DIM),
        transcendentals=B * (HIDDEN + OUT_DIM),
        bytes_accessed=4 * B * (IN_DIM + OUT_DIM) + w_bytes,
    )

    return pl.pallas_call(
        _mlp_kernel,
        out_shape=jax.ShapeDtypeStruct((B, OUT_DIM), jnp.float32),
        grid=grid,
        in_specs=in_specs,
        out_specs=out_spec,
        compiler_params=pltpu.CompilerParams(
            dimension_semantics=("parallel",)),     # megacore on v7x
        cost_estimate=cost,
    )(x, *packed_params)


def _init_linear(key, fan_in, fan_out):
    """Mimics PyTorch nn.Linear default init: U[-1/sqrt(in), 1/sqrt(in)]."""
    kw, kb = jax.random.split(key)
    bound = 1.0 / math.sqrt(fan_in)
    # stored as (in, out) so the kernel computes x @ W (== PyTorch x @ W.T)
    w = jax.random.uniform(kw, (fan_in, fan_out), jnp.float32, -bound, bound)
    b = jax.random.uniform(kb, (1, fan_out), jnp.float32, -bound, bound)
    return w, b


def init_params(key):
    k1, k2, k3, k4 = jax.random.split(key, 4)
    return (
        _init_linear(k1, IN_DIM, HIDDEN),
        _init_linear(k2, HIDDEN, HIDDEN),
        _init_linear(k3, HIDDEN, HIDDEN),
        _init_linear(k4, HIDDEN, OUT_DIM),
    )


def _reference(x, params):
    (w1, b1), (w2, b2), (w3, b3), (w4, b4) = params
    h = jnp.maximum(x @ w1 + b1, 0.0)
    h = jnp.tanh(h @ w2 + b2)
    h = jnp.maximum(h @ w3 + b3, 0.0)
    return jax.nn.sigmoid(h @ w4 + b4)


if __name__ == "__main__":
    key = jax.random.PRNGKey(0)
    k_params, k_x = jax.random.split(key)

    params = init_params(k_params)
    packed = prepare_params(params)                 # one-time pad + bf16 cast

    batch = 8
    x = jax.random.normal(k_x, (batch, IN_DIM), jnp.float32)

    out = net_forward(x, packed)
    out = jax.block_until_ready(out)

    ref = _reference(x, params)                     # f32 reference
    assert out.shape == (batch, OUT_DIM), out.shape
    # bf16 MXU inputs (f32 accumulation) -> tolerance relaxed vs f32 reference.
    assert jnp.allclose(out, ref, atol=2e-2, rtol=2e-2), "mismatch vs JAX reference"

    print("KERNEL_OK")
</pallas_src>

<mosaic_0001>
module attributes {stable_mosaic.version = 11 : i64} {
  func.func @_mlp_kernel(%arg0: i32, %arg1: memref<8x120xf32, #tpu.memory_space<vmem>>, %arg2: memref<120x128xbf16, #tpu.memory_space<vmem>>, %arg3: memref<1x128xf32, #tpu.memory_space<vmem>>, %arg4: memref<128x128xbf16, #tpu.memory_space<vmem>>, %arg5: memref<1x128xf32, #tpu.memory_space<vmem>>, %arg6: memref<128x128xbf16, #tpu.memory_space<vmem>>, %arg7: memref<1x128xf32, #tpu.memory_space<vmem>>, %arg8: memref<128x240xbf16, #tpu.memory_space<vmem>>, %arg9: memref<1x240xf32, #tpu.memory_space<vmem>>, %arg10: memref<8x240xf32, #tpu.memory_space<vmem>>) attributes {dimension_semantics = [#tpu.dimension_semantics<parallel>], iteration_bounds = array<i64: 1>, scalar_prefetch = 0 : i64, scratch_operands = 0 : i64, tpu.core_type = #tpu.core_type<tc>, window_params = [{transform_indices = @transform_0, window_bounds = array<i64: 8, 120>}, {pipeline_mode = #tpu.pipeline_mode<synchronous>, transform_indices = @transform_1, window_bounds = array<i64: 120, 128>}, {pipeline_mode = #tpu.pipeline_mode<synchronous>, transform_indices = @transform_2, window_bounds = array<i64: 1, 128>}, {pipeline_mode = #tpu.pipeline_mode<synchronous>, transform_indices = @transform_3, window_bounds = array<i64: 128, 128>}, {pipeline_mode = #tpu.pipeline_mode<synchronous>, transform_indices = @transform_4, window_bounds = array<i64: 1, 128>}, {pipeline_mode = #tpu.pipeline_mode<synchronous>, transform_indices = @transform_5, window_bounds = array<i64: 128, 128>}, {pipeline_mode = #tpu.pipeline_mode<synchronous>, transform_indices = @transform_6, window_bounds = array<i64: 1, 128>}, {pipeline_mode = #tpu.pipeline_mode<synchronous>, transform_indices = @transform_7, window_bounds = array<i64: 128, 240>}, {pipeline_mode = #tpu.pipeline_mode<synchronous>, transform_indices = @transform_8, window_bounds = array<i64: 1, 240>}, {transform_indices = @transform_9, window_bounds = array<i64: 8, 240>}]} {
    %c0 = arith.constant 0 : index
    %c0_0 = arith.constant 0 : index
    %0 = vector.load %arg1[%c0, %c0_0] : memref<8x120xf32, #tpu.memory_space<vmem>>, vector<8x120xf32>
    %1 = arith.truncf %0 : vector<8x120xf32> to vector<8x120xbf16>
    %c0_1 = arith.constant 0 : index
    %c0_2 = arith.constant 0 : index
    %2 = vector.load %arg2[%c0_1, %c0_2] : memref<120x128xbf16, #tpu.memory_space<vmem>>, vector<120x128xbf16>
    %cst = arith.constant dense<0.000000e+00> : vector<8x128xf32>
    %3 = tpu.matmul %1, %2, %cst {dimension_numbers = #tpu.dot_dimension_numbers<[1], [0], [0], [1], [0, 0, 1, 1], [], []>} : vector<8x120xbf16>, vector<120x128xbf16>, vector<8x128xf32> -> vector<8x128xf32>
    %c0_3 = arith.constant 0 : index
    %c0_4 = arith.constant 0 : index
    %4 = vector.load %arg3[%c0_3, %c0_4] : memref<1x128xf32, #tpu.memory_space<vmem>>, vector<1x128xf32>
    %5 = vector.broadcast %4 : vector<1x128xf32> to vector<8x128xf32>
    %6 = arith.addf %3, %5 : vector<8x128xf32>
    %cst_5 = arith.constant 0.000000e+00 : f32
    %7 = vector.broadcast %cst_5 : f32 to vector<8x128xf32>
    %8 = arith.maximumf %6, %7 : vector<8x128xf32>
    %9 = arith.truncf %8 : vector<8x128xf32> to vector<8x128xbf16>
    %c0_6 = arith.constant 0 : index
    %c0_7 = arith.constant 0 : index
    %10 = vector.load %arg4[%c0_6, %c0_7] : memref<128x128xbf16, #tpu.memory_space<vmem>>, vector<128x128xbf16>
    %cst_8 = arith.constant dense<0.000000e+00> : vector<8x128xf32>
    %11 = tpu.matmul %9, %10, %cst_8 {dimension_numbers = #tpu.dot_dimension_numbers<[1], [0], [0], [1], [0, 0, 1, 1], [], []>} : vector<8x128xbf16>, vector<128x128xbf16>, vector<8x128xf32> -> vector<8x128xf32>
    %c0_9 = arith.constant 0 : index
    %c0_10 = arith.constant 0 : index
    %12 = vector.load %arg5[%c0_9, %c0_10] : memref<1x128xf32, #tpu.memory_space<vmem>>, vector<1x128xf32>
    %13 = vector.broadcast %12 : vector<1x128xf32> to vector<8x128xf32>
    %14 = arith.addf %11, %13 : vector<8x128xf32>
    %15 = math.tanh %14 : vector<8x128xf32>
    %16 = arith.truncf %15 : vector<8x128xf32> to vector<8x128xbf16>
    %c0_11 = arith.constant 0 : index
    %c0_12 = arith.constant 0 : index
    %17 = vector.load %arg6[%c0_11, %c0_12] : memref<128x128xbf16, #tpu.memory_space<vmem>>, vector<128x128xbf16>
    %cst_13 = arith.constant dense<0.000000e+00> : vector<8x128xf32>
    %18 = tpu.matmul %16, %17, %cst_13 {dimension_numbers = #tpu.dot_dimension_numbers<[1], [0], [0], [1], [0, 0, 1, 1], [], []>} : vector<8x128xbf16>, vector<128x128xbf16>, vector<8x128xf32> -> vector<8x128xf32>
    %c0_14 = arith.constant 0 : index
    %c0_15 = arith.constant 0 : index
    %19 = vector.load %arg7[%c0_14, %c0_15] : memref<1x128xf32, #tpu.memory_space<vmem>>, vector<1x128xf32>
    %20 = vector.broadcast %19 : vector<1x128xf32> to vector<8x128xf32>
    %21 = arith.addf %18, %20 : vector<8x128xf32>
    %cst_16 = arith.constant 0.000000e+00 : f32
    %22 = vector.broadcast %cst_16 : f32 to vector<8x128xf32>
    %23 = arith.maximumf %21, %22 : vector<8x128xf32>
    %24 = arith.truncf %23 : vector<8x128xf32> to vector<8x128xbf16>
    %c0_17 = arith.constant 0 : index
    %c0_18 = arith.constant 0 : index
    %25 = vector.load %arg8[%c0_17, %c0_18] : memref<128x240xbf16, #tpu.memory_space<vmem>>, vector<128x240xbf16>
    %cst_19 = arith.constant dense<0.000000e+00> : vector<8x240xf32>
    %26 = tpu.matmul %24, %25, %cst_19 {dimension_numbers = #tpu.dot_dimension_numbers<[1], [0], [0], [1], [0, 0, 1, 1], [], []>} : vector<8x128xbf16>, vector<128x240xbf16>, vector<8x240xf32> -> vector<8x240xf32>
    %c0_20 = arith.constant 0 : index
    %c0_21 = arith.constant 0 : index
    %27 = vector.load %arg9[%c0_20, %c0_21] : memref<1x240xf32, #tpu.memory_space<vmem>>, vector<1x240xf32>
    %28 = vector.broadcast %27 : vector<1x240xf32> to vector<8x240xf32>
    %29 = arith.addf %26, %28 : vector<8x240xf32>
    %cst_22 = arith.constant 5.000000e-01 : f32
    %30 = vector.broadcast %cst_22 : f32 to vector<8x240xf32>
    %31 = arith.mulf %30, %29 : vector<8x240xf32>
    %32 = math.tanh %31 : vector<8x240xf32>
    %cst_23 = arith.constant 1.000000e+00 : f32
    %33 = vector.broadcast %cst_23 : f32 to vector<8x240xf32>
    %34 = arith.addf %32, %33 : vector<8x240xf32>
    %cst_24 = arith.constant 5.000000e-01 : f32
    %35 = vector.broadcast %cst_24 : f32 to vector<8x240xf32>
    %36 = arith.mulf %35, %34 : vector<8x240xf32>
    %c0_25 = arith.constant 0 : index
    %c0_26 = arith.constant 0 : index
    %37 = vector.load %arg10[%c0_25, %c0_26] : memref<8x240xf32, #tpu.memory_space<vmem>>, vector<8x240xf32>
    tpu.vector_store %arg10[%c0_25, %c0_26], %36 {strides = array<i32>} : memref<8x240xf32, #tpu.memory_space<vmem>>, vector<8x240xf32>,
    return
  }
  func.func @transform_0(%arg0: i32) -> (i32, i32) {
    %c0_i32 = arith.constant 0 : i32
    %c0_i32_0 = arith.constant 0 : i32
    return %arg0, %c0_i32 : i32, i32
  }
  func.func @transform_1(%arg0: i32) -> (i32, i32) {
    %c0_i32 = arith.constant 0 : i32
    %c0_i32_0 = arith.constant 0 : i32
    %c0_i32_1 = arith.constant 0 : i32
    return %c0_i32, %c0_i32_0 : i32, i32
  }
  func.func @transform_2(%arg0: i32) -> (i32, i32) {
    %c0_i32 = arith.constant 0 : i32
    %c0_i32_0 = arith.constant 0 : i32
    %c0_i32_1 = arith.constant 0 : i32
    return %c0_i32, %c0_i32_0 : i32, i32
  }
  func.func @transform_3(%arg0: i32) -> (i32, i32) {
    %c0_i32 = arith.constant 0 : i32
    %c0_i32_0 = arith.constant 0 : i32
    %c0_i32_1 = arith.constant 0 : i32
    return %c0_i32, %c0_i32_0 : i32, i32
  }
  func.func @transform_4(%arg0: i32) -> (i32, i32) {
    %c0_i32 = arith.constant 0 : i32
    %c0_i32_0 = arith.constant 0 : i32
    %c0_i32_1 = arith.constant 0 : i32
    return %c0_i32, %c0_i32_0 : i32, i32
  }
  func.func @transform_5(%arg0: i32) -> (i32, i32) {
    %c0_i32 = arith.constant 0 : i32
    %c0_i32_0 = arith.constant 0 : i32
    %c0_i32_1 = arith.constant 0 : i32
    return %c0_i32, %c0_i32_0 : i32, i32
  }
  func.func @transform_6(%arg0: i32) -> (i32, i32) {
    %c0_i32 = arith.constant 0 : i32
    %c0_i32_0 = arith.constant 0 : i32
    %c0_i32_1 = arith.constant 0 : i32
    return %c0_i32, %c0_i32_0 : i32, i32
  }
  func.func @transform_7(%arg0: i32) -> (i32, i32) {
    %c0_i32 = arith.constant 0 : i32
    %c0_i32_0 = arith.constant 0 : i32
    %c0_i32_1 = arith.constant 0 : i32
    return %c0_i32, %c0_i32_0 : i32, i32
  }
  func.func @transform_8(%arg0: i32) -> (i32, i32) {
    %c0_i32 = arith.constant 0 : i32
    %c0_i32_0 = arith.constant 0 : i32
    %c0_i32_1 = arith.constant 0 : i32
    return %c0_i32, %c0_i32_0 : i32, i32
  }
  func.func @transform_9(%arg0: i32) -> (i32, i32) {
    %c0_i32 = arith.constant 0 : i32
    %c0_i32_0 = arith.constant 0 : i32
    return %arg0, %c0_i32 : i32, i32
  }
}

</mosaic_0001>

<bundles_post_ra>
// kernel: net_forward.1
= control target key start
LH: loop header
LB: loop body
LE: loop exit
PB: predicated region body
PF: predicated region fallthrough
CT: control target
= control target key end

     0   :  { %vm103_vm0 = vcmask 1043456   ;;  %s912_s0 = inlined_call_operand.vmem [shape: f32[8,120], index: 0, kind: input, shape index: {}]   ;;  %s913_s1 = inlined_call_operand.vmem [shape: bf16[120,128], index: 1, kind: input, shape index: {}]   ;;  %s914_s2 = inlined_call_operand.vmem [shape: f32[1,128], index: 2, kind: input, shape index: {}]   ;;  %s915_s3 = inlined_call_operand.vmem [shape: bf16[128,128], index: 3, kind: input, shape index: {}]   ;;  %s916_s4 = inlined_call_operand.vmem [shape: f32[1,128], index: 4, kind: input, shape index: {}]   ;;  %s917_s5 = inlined_call_operand.vmem [shape: bf16[128,128], index: 5, kind: input, shape index: {}]   ;;  %s918_s6 = inlined_call_operand.vmem [shape: f32[1,128], index: 6, kind: input, shape index: {}]   ;;  %s919_s7 = inlined_call_operand.vmem [shape: bf16[128,240], index: 7, kind: input, shape index: {}]   ;;  %s920_s8 = inlined_call_operand.vmem [shape: f32[1,240], index: 8, kind: input, shape index: {}]   ;;  %s921_s9 = inlined_call_operand.hbm [shape: f32[8,240], index: 9, kind: output, shape index: {}]  }
   0x1   :  { %v49_v0 = vld [vmem:[%s913_s1 + $0x38] sm:$0xf] }
   0x2   :  { %v83_v1 = vunpack.c.l.b16 %v49_v0 }
   0x4   :  { %v91_v2 = vpack.c.b16 %v83_v1, %v83_v1 }
   0x5   :  { %14 = vsyncpa [#allocation3], 0  ;;  %v614_v4 = vld [vmem:[%s915_s3 + $0x38] sm:$0xff]  ;;  %v606_v5 = vld [vmem:[%s913_s1 + $0x30] sm:$0xff]  ;;  %vm99_vm1 = vcmask 982016   ;;  %vm425_vm2 = vcmask 916480  }
   0x6   :  { %v105_v3 = vsel %vm103_vm0, %v91_v2, 0  ;;  %190 = vmatpush.bf16.msra.mxu1 %v614_v4  ;;  %v613_v6 = vld [vmem:[%s915_s3 + $0x30] sm:$0xff]  ;;  %v605_v7 = vld [vmem:[%s913_s1 + $0x28] sm:$0xff]  ;;  %v604_v9 = vld [vmem:[%s913_s1 + $0x20] sm:$0xff]  ;;  %s434_s29 = sshll.u32 %s921_s9, 4  ;;  %s435_s29 = int_to_ptr.hbm [resolvable:$true] %s434_s29 }
   0x7   :  { %107 = vmatpush.bf16.msra.mxu0 %v105_v3  ;;  %v612_v8 = vld [vmem:[%s915_s3 + $0x28] sm:$0xff]  ;;  %v611_v10 = vld [vmem:[%s915_s3 + $0x20] sm:$0xff]  ;;  %v603_v11 = vld [vmem:[%s913_s1 + $0x18] sm:$0xff] }
   0x8   :  { %v610_v12 = vld [vmem:[%s915_s3 + $0x18] sm:$0xff]  ;;  %v602_v13 = vld [vmem:[%s913_s1 + $0x10] sm:$0xff]  ;;  %v601_v15 = vld [vmem:[%s913_s1 + $0x8] sm:$0xff] }
   0x9   :  { %v609_v14 = vld [vmem:[%s915_s3 + $0x10] sm:$0xff]  ;;  %v600_v16 = vld [vmem:[%s913_s1] sm:$0xff]  ;;  %v608_v19 = vld [vmem:[%s915_s3 + $0x8] sm:$0xff] }
   0xa   :  { %191 = vmatpush.bf16.msra.mxu1 %v613_v6  ;;  %v33_v17 = vld [vmem:[%s912_s0] sm:$0xff]  ;;  %v622_v21 = vld [vmem:[%s917_s5 + $0x38] sm:$0xff]  ;;  %v621_v22 = vld [vmem:[%s917_s5 + $0x30] sm:$0xff] }
   0xb   :  { %108 = vmatpush.bf16.msra.mxu0 %v606_v5  ;;  %v34_v18 = vpack.c.bf16 %v33_v17, %v33_v17  ;;  %v607_v20 = vld [vmem:[%s915_s3] sm:$0xff]  ;;  %273 = vmatpush.bf16.msra.mxu2 %v622_v21  ;;  %v620_v23 = vld [vmem:[%s917_s5 + $0x28] sm:$0xff]  ;;  %v618_v25 = vld [vmem:[%s917_s5 + $0x18] sm:$0xff] }
   0xc   :  { %v619_v24 = vld [vmem:[%s917_s5 + $0x20] sm:$0xff]  ;;  %v617_v32 = vld [vmem:[%s917_s5 + $0x10] sm:$0xff]  ;;  %v616_v33 = vld [vmem:[%s917_s5 + $0x8] sm:$0xff] }
   0xd   :  { %v640_v26 = vld [vmem:[%s914_s2] ss:$0 sm:$0xff]  ;;  %v594_v35 = vld [vmem:[%s919_s7 + $0x70] sm:$0xf]  ;;  %v638_v36 = vld [vmem:[%s919_s7 + $0x74] sm:$0xf0] }
   0xe   :  { %192 = vmatpush.bf16.msra.mxu1 %v612_v8  ;;  %v615_v34 = vld [vmem:[%s917_s5] sm:$0xff]  ;;  %v637_v37 = vld [vmem:[%s919_s7 + $0x74] sm:$0xf]  ;;  %v595_v38 = vor.u32 %v638_v36, %v594_v35  ;;  %v596_v39 = vld [vmem:[%s919_s7 + $0x78] sm:$0xf0] }
   0xf   :  { %109 = vmatpush.bf16.msra.mxu0 %v605_v7  ;;  %274 = vmatpush.bf16.msra.mxu2 %v621_v22  ;;  %v586_v40 = vld [vmem:[%s919_s7 + $0x60] sm:$0xf]  ;;  %v636_v41 = vld [vmem:[%s919_s7 + $0x64] sm:$0xf0]  ;;  %v599_v42 = vor.u32 %v637_v37, %v596_v39  ;;  %v635_v43 = vld [vmem:[%s919_s7 + $0x64] sm:$0xf] }
  0x10   :  { %v588_v44 = vld [vmem:[%s919_s7 + $0x68] sm:$0xf0]  ;;  %390 = vmatpush.bf16.msra.mxu3 %v595_v38  ;;  %v587_v45 = vor.u32 %v636_v41, %v586_v40  ;;  %v578_v47 = vld [vmem:[%s919_s7 + $0x50] sm:$0xf]  ;;  %v634_v48 = vld [vmem:[%s919_s7 + $0x54] sm:$0xf0] }
  0x11   :  { %v591_v46 = vor.u32 %v635_v43, %v588_v44  ;;  %v633_v49 = vld [vmem:[%s919_s7 + $0x54] sm:$0xf]  ;;  %v580_v50 = vld [vmem:[%s919_s7 + $0x58] sm:$0xf0]  ;;  %v579_v51 = vor.u32 %v634_v48, %v578_v47  ;;  %v570_v53 = vld [vmem:[%s919_s7 + $0x40] sm:$0xf] }
  0x12   :  { %193 = vmatpush.bf16.msra.mxu1 %v611_v10  ;;  %v583_v52 = vor.u32 %v633_v49, %v580_v50  ;;  %v632_v54 = vld [vmem:[%s919_s7 + $0x44] sm:$0xf0]  ;;  %v631_v55 = vld [vmem:[%s919_s7 + $0x44] sm:$0xf]  ;;  %v572_v56 = vld [vmem:[%s919_s7 + $0x48] sm:$0xf0] }
  0x13   :  { %110 = vmatpush.bf16.msra.mxu0 %v604_v9  ;;  %275 = vmatpush.bf16.msra.mxu2 %v620_v23  ;;  %v571_v57 = vor.u32 %v632_v54, %v570_v53  ;;  %v575_v58 = vor.u32 %v631_v55, %v572_v56  ;;  %v562_v59 = vld [vmem:[%s919_s7 + $0x30] sm:$0xf]  ;;  %v630_v60 = vld [vmem:[%s919_s7 + $0x34] sm:$0xf0]  ;;  %v629_v61 = vld [vmem:[%s919_s7 + $0x34] sm:$0xf] }
  0x14   :  { %391 = vmatpush.bf16.msra.mxu3 %v587_v45  ;;  %v564_v62 = vld [vmem:[%s919_s7 + $0x38] sm:$0xf0]  ;;  %v563_v63 = vor.u32 %v630_v60, %v562_v59  ;;  %v554_v1 = vld [vmem:[%s919_s7 + $0x20] sm:$0xf]  ;;  %v628_v2 = vld [vmem:[%s919_s7 + $0x24] sm:$0xf0] }
  0x15   :  { %v567_v0 = vor.u32 %v629_v61, %v564_v62  ;;  %v641_v3 = vld [vmem:[%s916_s4] ss:$0 sm:$0xff]  ;;  %v627_v4 = vld [vmem:[%s919_s7 + $0x24] sm:$0xf]  ;;  %v556_v5 = vld [vmem:[%s919_s7 + $0x28] sm:$0xf0]  ;;  %v555_v6 = vor.u32 %v628_v2, %v554_v1 }
  0x16   :  { %194 = vmatpush.bf16.msra.mxu1 %v610_v12  ;;  %v559_v8 = vor.u32 %v627_v4, %v556_v5  ;;  %v548_v17 = vld [vmem:[%s919_s7 + $0x18] sm:$0xf0]  ;;  %v623_v21 = vld [vmem:[%s919_s7 + $0x4] sm:$0xf]  ;;  %v540_v23 = vld [vmem:[%s919_s7 + $0x8] sm:$0xf0] }
  0x17   :  { %111 = vmatpush.bf16.msra.mxu0 %v603_v11  ;;  %276 = vmatpush.bf16.msra.mxu2 %v619_v24  ;;  %v543_v24 = vor.u32 %v623_v21, %v540_v23 }
  0x18   :  { %392 = vmatpush.bf16.msra.mxu3 %v579_v51 }
  0x1a   :  { %195 = vmatpush.bf16.msra.mxu1 %v609_v14  ;;  %v626_v14 = vld [vmem:[%s919_s7 + $0x14] sm:$0xf0] }
  0x1b   :  { %112 = vmatpush.bf16.msra.mxu0 %v602_v13  ;;  %277 = vmatpush.bf16.msra.mxu2 %v618_v25  ;;  %v546_v13 = vld [vmem:[%s919_s7 + $0x10] sm:$0xf]  ;;  %v642_v25 = vld [vmem:[%s918_s6] ss:$0 sm:$0xff]  ;;  %s675_s6 = smov [#allocation2]  }
  0x1c   :  { %393 = vmatpush.bf16.msra.mxu3 %v571_v57 }
  0x1e   :  { %196 = vmatpush.bf16.msra.mxu1 %v608_v19  ;;  %v538_v19 = vld [vmem:[%s919_s7] sm:$0xf] }
  0x1f   :  { %113 = vmatpush.bf16.msra.mxu0 %v601_v15  ;;  %278 = vmatpush.bf16.msra.mxu2 %v617_v32  ;;  %v625_v15 = vld [vmem:[%s919_s7 + $0x14] sm:$0xf] }
  0x20   :  { %394 = vmatpush.bf16.msra.mxu3 %v563_v63 }
  0x22   :  { %197 = vmatpush.bf16.msra.mxu1 %v607_v20  ;;  %v624_v20 = vld [vmem:[%s919_s7 + $0x4] sm:$0xf0]  ;;  %s432_s7 = sshll.u32 %s675_s6, 4  ;;  %s433_s7 = int_to_ptr.vmem [resolvable:$true] %s432_s7 }
  0x23   :  { %114 = vmatpush.bf16.msra.mxu0 %v600_v16  ;;  %279 = vmatpush.bf16.msra.mxu2 %v616_v33  ;;  %v547_v16 = vor.u32 %v626_v14, %v546_v13  ;;  %v539_v22 = vor.u32 %v624_v20, %v538_v19 }
  0x24   :  { %395 = vmatpush.bf16.msra.mxu3 %v555_v6 }
  0x26   :  { %471 = vmatmul.msk.bf16.vlgmr.msra.gmra.mxu0 %vm99_vm1, %v34_v18  ;;  %v551_v18 = vor.u32 %v625_v15, %v548_v17 }
  0x27   :  { %280 = vmatpush.bf16.msra.mxu2 %v615_v34  ;;  %403 = vmatpush.bf16.msrb.mxu0 %v599_v42 }
  0x28   :  { %396 = vmatpush.bf16.msra.mxu3 %v547_v16 }
  0x2b   :  { %404 = vmatpush.bf16.msrb.mxu0 %v591_v46 }
  0x2c   :  { %397 = vmatpush.bf16.msra.mxu3 %v539_v22 }
  0x2f   :  { %405 = vmatpush.bf16.msrb.mxu0 %v583_v52 }
  0x33   :  { %406 = vmatpush.bf16.msrb.mxu0 %v575_v58 }
  0x37   :  { %407 = vmatpush.bf16.msrb.mxu0 %v567_v0 }
  0x3b   :  { %408 = vmatpush.bf16.msrb.mxu0 %v559_v8 }
  0x3f   :  { %409 = vmatpush.bf16.msrb.mxu0 %v551_v18 }
  0x43   :  { %410 = vmatpush.bf16.msrb.mxu0 %v543_v24 }
  0xa3   :  { %v116_v27 = vpop.f32.mrf.mxu0 }
  0xa4   :  { %v117_v28 = vadd.f32 %v640_v26, %v116_v27 }
  0xa6   :  { %v120_v29 = vmax.f32 %v117_v28, 0.0 }
  0xa8   :  { %v121_v30 = vpack.c.bf16 %v120_v29, %v120_v29 }
  0xaa   :  { %198 = vmatmul.bf16.vlgmr.msra.gmra.mxu1 %v121_v30 }
  0xab   :  { %v118_v31 = vpop.f32.mrf.mxu0 }
  0xac   :  { %v304_v31 = vld [vmem:[%s920_s8] sm:$0x3] }
  0xad   :  { %v307_v32 = vperm.slane %v304_v31, 1  ;;  %v306_v36 = vperm.slane %v304_v31, 0 }
 0x127   :  { %v199_v7 = vpop.f32.mrf.mxu1 }
 0x128   :  { %v200_v9 = vadd.f32 %v641_v3, %v199_v7 }
 0x12a   :  { %643 = vtanh.f32 %v200_v9 }
 0x12f   :  { %v201_v10 = vpop.f32.mrf.mxu1 }
 0x130   :  { %v644_v11 = vpop.eup %643 }
 0x131   :  { %v204_v12 = vpack.c.bf16 %v644_v11, %v644_v11 }
 0x133   :  { %281 = vmatmul.bf16.vlgmr.msra.gmra.mxu2 %v204_v12 }
 0x1b6   :  { %v282_v26 = vpop.f32.mrf.mxu2 }
 0x1b7   :  { %v283_v27 = vadd.f32 %v642_v25, %v282_v26 }
 0x1b9   :  { %v286_v28 = vmax.f32 %v283_v27, 0.0 }
 0x1bb   :  { %v287_v29 = vpack.c.bf16 %v286_v28, %v286_v28 }
 0x1bd   :  { %398 = vmatmul.bf16.vlgmr.msra.gmra.mxu3 %v287_v29  ;;  %411 = vmatmul.bf16.vlgmr.msrb.gmra.mxu0 %v287_v29 }
 0x1be   :  { %v284_v30 = vpop.f32.mrf.mxu2 }
 0x23a   :  { %v412_v33 = vpop.f32.mrf.mxu0 }
 0x23b   :  { %v413_v34 = vadd.f32 %v412_v33, %v307_v32 }
 0x23d   :  { %v417_v35 = vmul.f32 0.5, %v413_v34 }
 0x23f   :  { %645 = vtanh.f32 %v417_v35 }
 0x240   :  { %v399_v37 = vpop.f32.mrf.mxu3 }
 0x241   :  { %v400_v38 = vadd.f32 %v399_v37, %v306_v36 }
 0x242   :  { %v414_v39 = vpop.f32.mrf.mxu0 }
 0x243   :  { %v416_v40 = vmul.f32 0.5, %v400_v38 }
 0x245   :  { %v646_v41 = vpop.eup %645  ;;  %647 = vtanh.f32 %v416_v40 }
 0x246   :  { %v421_v42 = vadd.f32 1.0, %v646_v41 }
 0x248   :  { %v423_v43 = vmul.f32 0.5, %v421_v42  ;;  %v401_v44 = vpop.f32.mrf.mxu3 }
 0x24a   :  { %426 = vst.msk [vmem:[#allocation2 + $0x8] sm:$0xff] %vm425_vm2, %v423_v43 }
 0x24b   :  { %v648_v45 = vpop.eup %647 }
 0x24c   :  { %v420_v46 = vadd.f32 1.0, %v648_v45 }
 0x24e   :  { %v422_v47 = vmul.f32 0.5, %v420_v46 }
 0x250   :  { %424 = vst [vmem:[#allocation2] sm:$0xff] %v422_v47 }
 0x251   :  { %437 = dma.vmem_to_hbm [thread:$0]  %s433_s7, 256, %s435_s29, [#allocation3]  }
 0x252   :  { %673 = dma.done.wait [#allocation3], 256  }
 0x253   :  { %674 = vsyncadd [#allocation3], 4294967040 }
 0x254   :  { %442 = vsyncpa [#allocation3], 1 }

</bundles_post_ra>
